<compile_context>
chip_gen: v6e
topology: v6e:2x2x1
jax: 0.10.0
libtpu: 0.0.40
codegen_flags: <defaults>
</compile_context>

<pallas_src>
import functools

import numpy as np
import jax
import jax.numpy as jnp
from jax import lax
from jax.experimental import pallas as pl
from jax.experimental.pallas import tpu as pltpu


def _gcn_kernel(bt, n, inv_sqrt_nfr,
                x_ref, mask_ref, wth_ref, bth_ref, wph_ref, bph_ref, w_ref,
                out_ref, rel_ref, theta_ref, phi_ref):
    x = x_ref[...]                                          # (BT*N, NFG)

    # Relation embeddings, batched over all BT*N rows (2 MXU pushes total).
    theta_ref[...] = (jnp.dot(x, wth_ref[...],
                              preferred_element_type=jnp.float32)
                      + bth_ref[...])
    phi_ref[...] = (jnp.dot(x, wph_ref[...],
                            preferred_element_type=jnp.float32)
                    + bph_ref[...])

    # Per-slab similarity theta_b @ phi_b^T (genuinely per (b, t)); stage the
    # rows directly into the rel output buffer (static sublane offsets).
    for b in range(bt):
        rows = pl.ds(b * n, n)
        sim_b = lax.dot_general(theta_ref[rows, :], phi_ref[rows, :],
                                (((1,), (1,)), ((), ())),
                                preferred_element_type=jnp.float32)
        rel_ref[rows, :] = sim_b * inv_sqrt_nfr

    # Masked softmax, sublane-dense over all BT*N rows at once.
    # Diagonal distance is 0 < thresh, so every row has >=1 unmasked entry.
    sim = jnp.where(mask_ref[...] > 0.5, -jnp.inf, rel_ref[...])
    m = jnp.max(sim, axis=-1, keepdims=True)
    e = jnp.exp(sim - m)
    rel_ref[...] = e / jnp.sum(e, axis=-1, keepdims=True)

    # Per-slab message passing rel_b @ x_b, staged into the output buffer.
    for b in range(bt):
        rows = pl.ds(b * n, n)
        out_ref[rows, :] = jnp.dot(rel_ref[rows, :], x_ref[rows, :],
                                   preferred_element_type=jnp.float32)

    # Final projection, batched over all rows: one MXU push, one lane-dense
    # (BT*N, NFG) store.
    out_ref[...] = jnp.dot(out_ref[...], w_ref[...],
                           preferred_element_type=jnp.float32)


def gcn_forward(graph_boxes_features, boxes_in_flat, params, cfg):
    B, T, N, NFG = graph_boxes_features.shape
    NFR = cfg["num_features_relation"]
    _, OW = cfg["out_size"]
    thresh = float(cfg["pos_threshold"] * OW)
    BT = B * T
    BTN = BT * N

    x2 = graph_boxes_features.reshape(BTN, NFG).astype(jnp.float32)

    # Box centers (matches the in-place column ops in the torch forward).
    cx = (boxes_in_flat[:, 0] + boxes_in_flat[:, 2]) * 0.5
    cy = (boxes_in_flat[:, 1] + boxes_in_flat[:, 3]) * 0.5
    pos = jnp.stack([cx, cy], axis=-1).reshape(BT, N, 2).astype(jnp.float32)

    # Position mask precomputed in the wrapper from squared distances
    # (dist^2 > thresh^2  <=>  dist > thresh; avoids the sqrt NaN hazard).
    sq = jnp.sum(pos * pos, axis=-1)                              # (BT, N)
    gram = jnp.einsum("bnc,bmc->bnm", pos, pos)                   # (BT, N, N)
    d2 = sq[:, :, None] - 2.0 * gram + sq[:, None, :]
    mask2 = (d2 > thresh * thresh).astype(jnp.float32).reshape(BTN, N)

    wth = params["fc_rn_theta_w"].T.astype(jnp.float32)           # (NFG, NFR)
    bth = params["fc_rn_theta_b"].reshape(1, NFR).astype(jnp.float32)
    wph = params["fc_rn_phi_w"].T.astype(jnp.float32)             # (NFG, NFR)
    bph = params["fc_rn_phi_b"].reshape(1, NFR).astype(jnp.float32)
    W = params["W"].astype(jnp.float32)                           # (NFG, NFG)

    kernel = functools.partial(_gcn_kernel, BT, N, float(1.0 / np.sqrt(NFR)))

    vmem = pl.BlockSpec(memory_space=pltpu.MemorySpace.VMEM)
    out2, rel2 = pl.pallas_call(
        kernel,
        out_shape=(
            jax.ShapeDtypeStruct((BTN, NFG), jnp.float32),
            jax.ShapeDtypeStruct((BTN, N), jnp.float32),
        ),
        in_specs=[vmem] * 7,
        out_specs=(vmem, vmem),
        scratch_shapes=[
            pltpu.VMEM((BTN, NFR), jnp.float32),   # theta
            pltpu.VMEM((BTN, NFR), jnp.float32),   # phi
        ],
    )(x2, mask2, wth, bth, wph, bph, W)

    return out2.reshape(B, T, N, NFG), rel2.reshape(B, T, N, N)


def gcn_reference(graph_boxes_features, boxes_in_flat, params, cfg):
    """Pure-JAX reference mirroring the torch forward."""
    B, T, N, NFG = graph_boxes_features.shape
    NFR = cfg["num_features_relation"]
    _, OW = cfg["out_size"]
    thresh = cfg["pos_threshold"] * OW

    cx = (boxes_in_flat[:, 0] + boxes_in_flat[:, 2]) * 0.5
    cy = (boxes_in_flat[:, 1] + boxes_in_flat[:, 3]) * 0.5
    pos = jnp.stack([cx, cy], axis=-1).reshape(B * T, N, 2)
    rx = jnp.sum(pos ** 2, axis=2)[:, :, None]
    d2 = rx - 2.0 * jnp.einsum("bnc,bmc->bnm", pos, pos) + rx.transpose(0, 2, 1)
    mask = (d2 > thresh * thresh).reshape(B, T, N, N)

    theta = graph_boxes_features @ params["fc_rn_theta_w"].T + params["fc_rn_theta_b"]
    phi = graph_boxes_features @ params["fc_rn_phi_w"].T + params["fc_rn_phi_b"]
    sim = jnp.einsum("btnr,btmr->btnm", theta, phi) / np.sqrt(NFR)
    sim = jnp.where(mask, -jnp.inf, sim)
    rel = jax.nn.softmax(sim, axis=3)
    pool = jnp.einsum("btnm,btmf->btnf", rel, graph_boxes_features)
    out = pool @ params["W"]
    return out, rel


if __name__ == "__main__":
    cfg = dict(num_features_relation=16, num_graph=4, num_boxes=12,
               num_frames=3, num_features_gcn=32, num_features_boxes=32,
               out_size=(8, 16), pos_threshold=0.2)
    B = 2
    T, N = cfg["num_frames"], cfg["num_boxes"]
    NFG, NFR = cfg["num_features_gcn"], cfg["num_features_relation"]

    key = jax.random.PRNGKey(0)
    k1, k2, k3, k4, k5, k6, k7 = jax.random.split(key, 7)

    feats = jax.random.normal(k1, (B, T, N, NFG), jnp.float32)
    boxes = jax.random.uniform(k2, (B * T * N, 4), jnp.float32,
                               minval=0.0, maxval=float(cfg["out_size"][1]))

    # deterministic synthetic params (torch inits W to zeros; use nonzero here
    # so the final matmul is actually exercised)
    params = {
        "W": 0.05 * jax.random.normal(k3, (cfg["num_features_boxes"], NFG), jnp.float32),
        "fc_rn_theta_w": 0.1 * jax.random.normal(k4, (NFR, NFG), jnp.float32),
        "fc_rn_theta_b": 0.1 * jax.random.normal(k5, (NFR,), jnp.float32),
        "fc_rn_phi_w": 0.1 * jax.random.normal(k6, (NFR, NFG), jnp.float32),
        "fc_rn_phi_b": 0.1 * jax.random.normal(k7, (NFR,), jnp.float32),
    }

    out, rel = jax.block_until_ready(gcn_forward(feats, boxes, params, cfg))
    ref_out, ref_rel = gcn_reference(feats, boxes, params, cfg)

    assert out.shape == (B, T, N, NFG) and rel.shape == (B, T, N, N)
    assert np.allclose(np.asarray(out), np.asarray(ref_out), rtol=1e-4, atol=1e-4)
    assert np.allclose(np.asarray(rel), np.asarray(ref_rel), rtol=1e-4, atol=1e-4)
    print("KERNEL_OK")
</pallas_src>

<mosaic_0001>
module attributes {stable_mosaic.version = 11 : i64} {
  func.func @_gcn_kernel(%arg0: memref<72x32xf32, #tpu.memory_space<vmem>>, %arg1: memref<72x12xf32, #tpu.memory_space<vmem>>, %arg2: memref<32x16xf32, #tpu.memory_space<vmem>>, %arg3: memref<1x16xf32, #tpu.memory_space<vmem>>, %arg4: memref<32x16xf32, #tpu.memory_space<vmem>>, %arg5: memref<1x16xf32, #tpu.memory_space<vmem>>, %arg6: memref<32x32xf32, #tpu.memory_space<vmem>>, %arg7: memref<72x32xf32, #tpu.memory_space<vmem>>, %arg8: memref<72x12xf32, #tpu.memory_space<vmem>>, %arg9: memref<72x16xf32, #tpu.memory_space<vmem>>, %arg10: memref<72x16xf32, #tpu.memory_space<vmem>>) attributes {dimension_semantics = [], scalar_prefetch = 0 : i64, scratch_operands = 2 : i64, tpu.core_type = #tpu.core_type<tc>} {
    %c0 = arith.constant 0 : index
    %c0_0 = arith.constant 0 : index
    %0 = vector.load %arg0[%c0, %c0_0] : memref<72x32xf32, #tpu.memory_space<vmem>>, vector<72x32xf32>
    %c0_1 = arith.constant 0 : index
    %c0_2 = arith.constant 0 : index
    %1 = vector.load %arg2[%c0_1, %c0_2] : memref<32x16xf32, #tpu.memory_space<vmem>>, vector<32x16xf32>
    %cst = arith.constant dense<0.000000e+00> : vector<72x16xf32>
    %2 = tpu.matmul %0, %1, %cst {dimension_numbers = #tpu.dot_dimension_numbers<[1], [0], [0], [1], [0, 0, 1, 1], [], []>} : vector<72x32xf32>, vector<32x16xf32>, vector<72x16xf32> -> vector<72x16xf32>
    %c0_3 = arith.constant 0 : index
    %c0_4 = arith.constant 0 : index
    %3 = vector.load %arg3[%c0_3, %c0_4] : memref<1x16xf32, #tpu.memory_space<vmem>>, vector<1x16xf32>
    %4 = vector.broadcast %3 : vector<1x16xf32> to vector<72x16xf32>
    %5 = arith.addf %2, %4 : vector<72x16xf32>
    %c0_5 = arith.constant 0 : index
    %c0_6 = arith.constant 0 : index
    %6 = vector.load %arg9[%c0_5, %c0_6] : memref<72x16xf32, #tpu.memory_space<vmem>>, vector<72x16xf32>
    tpu.vector_store %arg9[%c0_5, %c0_6], %5 {strides = array<i32>} : memref<72x16xf32, #tpu.memory_space<vmem>>, vector<72x16xf32>,
    %c0_7 = arith.constant 0 : index
    %c0_8 = arith.constant 0 : index
    %7 = vector.load %arg4[%c0_7, %c0_8] : memref<32x16xf32, #tpu.memory_space<vmem>>, vector<32x16xf32>
    %cst_9 = arith.constant dense<0.000000e+00> : vector<72x16xf32>
    %8 = tpu.matmul %0, %7, %cst_9 {dimension_numbers = #tpu.dot_dimension_numbers<[1], [0], [0], [1], [0, 0, 1, 1], [], []>} : vector<72x32xf32>, vector<32x16xf32>, vector<72x16xf32> -> vector<72x16xf32>
    %c0_10 = arith.constant 0 : index
    %c0_11 = arith.constant 0 : index
    %9 = vector.load %arg5[%c0_10, %c0_11] : memref<1x16xf32, #tpu.memory_space<vmem>>, vector<1x16xf32>
    %10 = vector.broadcast %9 : vector<1x16xf32> to vector<72x16xf32>
    %11 = arith.addf %8, %10 : vector<72x16xf32>
    %c0_12 = arith.constant 0 : index
    %c0_13 = arith.constant 0 : index
    %12 = vector.load %arg10[%c0_12, %c0_13] : memref<72x16xf32, #tpu.memory_space<vmem>>, vector<72x16xf32>
    tpu.vector_store %arg10[%c0_12, %c0_13], %11 {strides = array<i32>} : memref<72x16xf32, #tpu.memory_space<vmem>>, vector<72x16xf32>,
    %c0_14 = arith.constant 0 : index
    %c0_15 = arith.constant 0 : index
    %13 = vector.load %arg9[%c0_14, %c0_15] : memref<72x16xf32, #tpu.memory_space<vmem>>, vector<12x16xf32>
    %c0_16 = arith.constant 0 : index
    %c0_17 = arith.constant 0 : index
    %14 = vector.load %arg10[%c0_16, %c0_17] : memref<72x16xf32, #tpu.memory_space<vmem>>, vector<12x16xf32>
    %cst_18 = arith.constant dense<0.000000e+00> : vector<12x12xf32>
    %15 = tpu.matmul %13, %14, %cst_18 {dimension_numbers = #tpu.dot_dimension_numbers<[1], [1], [0], [0], [0, 0, 1, 0], [], []>} : vector<12x16xf32>, vector<12x16xf32>, vector<12x12xf32> -> vector<12x12xf32>
    %cst_19 = arith.constant 2.500000e-01 : f32
    %16 = vector.broadcast %cst_19 : f32 to vector<12x12xf32>
    %17 = arith.mulf %15, %16 : vector<12x12xf32>
    %c0_20 = arith.constant 0 : index
    %c0_21 = arith.constant 0 : index
    %18 = vector.load %arg8[%c0_20, %c0_21] : memref<72x12xf32, #tpu.memory_space<vmem>>, vector<12x12xf32>
    tpu.vector_store %arg8[%c0_20, %c0_21], %17 {strides = array<i32>} : memref<72x12xf32, #tpu.memory_space<vmem>>, vector<12x12xf32>,
    %c12 = arith.constant 12 : index
    %c0_22 = arith.constant 0 : index
    %19 = vector.load %arg9[%c12, %c0_22] : memref<72x16xf32, #tpu.memory_space<vmem>>, vector<12x16xf32>
    %c12_23 = arith.constant 12 : index
    %c0_24 = arith.constant 0 : index
    %20 = vector.load %arg10[%c12_23, %c0_24] : memref<72x16xf32, #tpu.memory_space<vmem>>, vector<12x16xf32>
    %cst_25 = arith.constant dense<0.000000e+00> : vector<12x12xf32>
    %21 = tpu.matmul %19, %20, %cst_25 {dimension_numbers = #tpu.dot_dimension_numbers<[1], [1], [0], [0], [0, 0, 1, 0], [], []>} : vector<12x16xf32>, vector<12x16xf32>, vector<12x12xf32> -> vector<12x12xf32>
    %cst_26 = arith.constant 2.500000e-01 : f32
    %22 = vector.broadcast %cst_26 : f32 to vector<12x12xf32>
    %23 = arith.mulf %21, %22 : vector<12x12xf32>
    %c12_27 = arith.constant 12 : index
    %c0_28 = arith.constant 0 : index
    %24 = vector.load %arg8[%c12_27, %c0_28] : memref<72x12xf32, #tpu.memory_space<vmem>>, vector<12x12xf32>
    tpu.vector_store %arg8[%c12_27, %c0_28], %23 {strides = array<i32>} : memref<72x12xf32, #tpu.memory_space<vmem>>, vector<12x12xf32>,
    %c24 = arith.constant 24 : index
    %c0_29 = arith.constant 0 : index
    %25 = vector.load %arg9[%c24, %c0_29] : memref<72x16xf32, #tpu.memory_space<vmem>>, vector<12x16xf32>
    %c24_30 = arith.constant 24 : index
    %c0_31 = arith.constant 0 : index
    %26 = vector.load %arg10[%c24_30, %c0_31] : memref<72x16xf32, #tpu.memory_space<vmem>>, vector<12x16xf32>
    %cst_32 = arith.constant dense<0.000000e+00> : vector<12x12xf32>
    %27 = tpu.matmul %25, %26, %cst_32 {dimension_numbers = #tpu.dot_dimension_numbers<[1], [1], [0], [0], [0, 0, 1, 0], [], []>} : vector<12x16xf32>, vector<12x16xf32>, vector<12x12xf32> -> vector<12x12xf32>
    %cst_33 = arith.constant 2.500000e-01 : f32
    %28 = vector.broadcast %cst_33 : f32 to vector<12x12xf32>
    %29 = arith.mulf %27, %28 : vector<12x12xf32>
    %c24_34 = arith.constant 24 : index
    %c0_35 = arith.constant 0 : index
    %30 = vector.load %arg8[%c24_34, %c0_35] : memref<72x12xf32, #tpu.memory_space<vmem>>, vector<12x12xf32>
    tpu.vector_store %arg8[%c24_34, %c0_35], %29 {strides = array<i32>} : memref<72x12xf32, #tpu.memory_space<vmem>>, vector<12x12xf32>,
    %c36 = arith.constant 36 : index
    %c0_36 = arith.constant 0 : index
    %31 = vector.load %arg9[%c36, %c0_36] : memref<72x16xf32, #tpu.memory_space<vmem>>, vector<12x16xf32>
    %c36_37 = arith.constant 36 : index
    %c0_38 = arith.constant 0 : index
    %32 = vector.load %arg10[%c36_37, %c0_38] : memref<72x16xf32, #tpu.memory_space<vmem>>, vector<12x16xf32>
    %cst_39 = arith.constant dense<0.000000e+00> : vector<12x12xf32>
    %33 = tpu.matmul %31, %32, %cst_39 {dimension_numbers = #tpu.dot_dimension_numbers<[1], [1], [0], [0], [0, 0, 1, 0], [], []>} : vector<12x16xf32>, vector<12x16xf32>, vector<12x12xf32> -> vector<12x12xf32>
    %cst_40 = arith.constant 2.500000e-01 : f32
    %34 = vector.broadcast %cst_40 : f32 to vector<12x12xf32>
    %35 = arith.mulf %33, %34 : vector<12x12xf32>
    %c36_41 = arith.constant 36 : index
    %c0_42 = arith.constant 0 : index
    %36 = vector.load %arg8[%c36_41, %c0_42] : memref<72x12xf32, #tpu.memory_space<vmem>>, vector<12x12xf32>
    tpu.vector_store %arg8[%c36_41, %c0_42], %35 {strides = array<i32>} : memref<72x12xf32, #tpu.memory_space<vmem>>, vector<12x12xf32>,
    %c48 = arith.constant 48 : index
    %c0_43 = arith.constant 0 : index
    %37 = vector.load %arg9[%c48, %c0_43] : memref<72x16xf32, #tpu.memory_space<vmem>>, vector<12x16xf32>
    %c48_44 = arith.constant 48 : index
    %c0_45 = arith.constant 0 : index
    %38 = vector.load %arg10[%c48_44, %c0_45] : memref<72x16xf32, #tpu.memory_space<vmem>>, vector<12x16xf32>
    %cst_46 = arith.constant dense<0.000000e+00> : vector<12x12xf32>
    %39 = tpu.matmul %37, %38, %cst_46 {dimension_numbers = #tpu.dot_dimension_numbers<[1], [1], [0], [0], [0, 0, 1, 0], [], []>} : vector<12x16xf32>, vector<12x16xf32>, vector<12x12xf32> -> vector<12x12xf32>
    %cst_47 = arith.constant 2.500000e-01 : f32
    %40 = vector.broadcast %cst_47 : f32 to vector<12x12xf32>
    %41 = arith.mulf %39, %40 : vector<12x12xf32>
    %c48_48 = arith.constant 48 : index
    %c0_49 = arith.constant 0 : index
    %42 = vector.load %arg8[%c48_48, %c0_49] : memref<72x12xf32, #tpu.memory_space<vmem>>, vector<12x12xf32>
    tpu.vector_store %arg8[%c48_48, %c0_49], %41 {strides = array<i32>} : memref<72x12xf32, #tpu.memory_space<vmem>>, vector<12x12xf32>,
    %c60 = arith.constant 60 : index
    %c0_50 = arith.constant 0 : index
    %43 = vector.load %arg9[%c60, %c0_50] : memref<72x16xf32, #tpu.memory_space<vmem>>, vector<12x16xf32>
    %c60_51 = arith.constant 60 : index
    %c0_52 = arith.constant 0 : index
    %44 = vector.load %arg10[%c60_51, %c0_52] : memref<72x16xf32, #tpu.memory_space<vmem>>, vector<12x16xf32>
    %cst_53 = arith.constant dense<0.000000e+00> : vector<12x12xf32>
    %45 = tpu.matmul %43, %44, %cst_53 {dimension_numbers = #tpu.dot_dimension_numbers<[1], [1], [0], [0], [0, 0, 1, 0], [], []>} : vector<12x16xf32>, vector<12x16xf32>, vector<12x12xf32> -> vector<12x12xf32>
    %cst_54 = arith.constant 2.500000e-01 : f32
    %46 = vector.broadcast %cst_54 : f32 to vector<12x12xf32>
    %47 = arith.mulf %45, %46 : vector<12x12xf32>
    %c60_55 = arith.constant 60 : index
    %c0_56 = arith.constant 0 : index
    %48 = vector.load %arg8[%c60_55, %c0_56] : memref<72x12xf32, #tpu.memory_space<vmem>>, vector<12x12xf32>
    tpu.vector_store %arg8[%c60_55, %c0_56], %47 {strides = array<i32>} : memref<72x12xf32, #tpu.memory_space<vmem>>, vector<12x12xf32>,
    %c0_57 = arith.constant 0 : index
    %c0_58 = arith.constant 0 : index
    %49 = vector.load %arg1[%c0_57, %c0_58] : memref<72x12xf32, #tpu.memory_space<vmem>>, vector<72x12xf32>
    %cst_59 = arith.constant 5.000000e-01 : f32
    %50 = vector.broadcast %cst_59 : f32 to vector<72x12xf32>
    %51 = arith.cmpf ogt, %49, %50 : vector<72x12xf32>
    %c0_60 = arith.constant 0 : index
    %c0_61 = arith.constant 0 : index
    %52 = vector.load %arg8[%c0_60, %c0_61] : memref<72x12xf32, #tpu.memory_space<vmem>>, vector<72x12xf32>
    %cst_62 = arith.constant 0xFF800000 : f32
    %53 = vector.broadcast %cst_62 : f32 to vector<72x12xf32>
    %54 = arith.select %51, %53, %52 : vector<72x12xi1>, vector<72x12xf32>
    %cst_63 = arith.constant dense<0xFF800000> : vector<72xf32>
    %55 = vector.multi_reduction <maximumf>, %54, %cst_63 [1] : vector<72x12xf32> to vector<72xf32>
    %56 = vector.shape_cast %55 : vector<72xf32> to vector<72x1xf32>
    %57 = vector.broadcast %56 : vector<72x1xf32> to vector<72x12xf32>
    %58 = arith.subf %54, %57 : vector<72x12xf32>
    %59 = math.exp %58 : vector<72x12xf32>
    %cst_64 = arith.constant dense<0.000000e+00> : vector<72xf32>
    %60 = vector.multi_reduction <add>, %59, %cst_64 [1] : vector<72x12xf32> to vector<72xf32>
    %61 = vector.shape_cast %60 : vector<72xf32> to vector<72x1xf32>
    %62 = vector.broadcast %61 : vector<72x1xf32> to vector<72x12xf32>
    %63 = arith.divf %59, %62 : vector<72x12xf32>
    %c0_65 = arith.constant 0 : index
    %c0_66 = arith.constant 0 : index
    %64 = vector.load %arg8[%c0_65, %c0_66] : memref<72x12xf32, #tpu.memory_space<vmem>>, vector<72x12xf32>
    tpu.vector_store %arg8[%c0_65, %c0_66], %63 {strides = array<i32>} : memref<72x12xf32, #tpu.memory_space<vmem>>, vector<72x12xf32>,
    %c0_67 = arith.constant 0 : index
    %c0_68 = arith.constant 0 : index
    %65 = vector.load %arg8[%c0_67, %c0_68] : memref<72x12xf32, #tpu.memory_space<vmem>>, vector<12x12xf32>
    %c0_69 = arith.constant 0 : index
    %c0_70 = arith.constant 0 : index
    %66 = vector.load %arg0[%c0_69, %c0_70] : memref<72x32xf32, #tpu.memory_space<vmem>>, vector<12x32xf32>
    %cst_71 = arith.constant dense<0.000000e+00> : vector<12x32xf32>
    %67 = tpu.matmul %65, %66, %cst_71 {dimension_numbers = #tpu.dot_dimension_numbers<[1], [0], [0], [1], [0, 0, 1, 1], [], []>} : vector<12x12xf32>, vector<12x32xf32>, vector<12x32xf32> -> vector<12x32xf32>
    %c0_72 = arith.constant 0 : index
    %c0_73 = arith.constant 0 : index
    %68 = vector.load %arg7[%c0_72, %c0_73] : memref<72x32xf32, #tpu.memory_space<vmem>>, vector<12x32xf32>
    tpu.vector_store %arg7[%c0_72, %c0_73], %67 {strides = array<i32>} : memref<72x32xf32, #tpu.memory_space<vmem>>, vector<12x32xf32>,
    %c12_74 = arith.constant 12 : index
    %c0_75 = arith.constant 0 : index
    %69 = vector.load %arg8[%c12_74, %c0_75] : memref<72x12xf32, #tpu.memory_space<vmem>>, vector<12x12xf32>
    %c12_76 = arith.constant 12 : index
    %c0_77 = arith.constant 0 : index
    %70 = vector.load %arg0[%c12_76, %c0_77] : memref<72x32xf32, #tpu.memory_space<vmem>>, vector<12x32xf32>
    %cst_78 = arith.constant dense<0.000000e+00> : vector<12x32xf32>
    %71 = tpu.matmul %69, %70, %cst_78 {dimension_numbers = #tpu.dot_dimension_numbers<[1], [0], [0], [1], [0, 0, 1, 1], [], []>} : vector<12x12xf32>, vector<12x32xf32>, vector<12x32xf32> -> vector<12x32xf32>
    %c12_79 = arith.constant 12 : index
    %c0_80 = arith.constant 0 : index
    %72 = vector.load %arg7[%c12_79, %c0_80] : memref<72x32xf32, #tpu.memory_space<vmem>>, vector<12x32xf32>
    tpu.vector_store %arg7[%c12_79, %c0_80], %71 {strides = array<i32>} : memref<72x32xf32, #tpu.memory_space<vmem>>, vector<12x32xf32>,
    %c24_81 = arith.constant 24 : index
    %c0_82 = arith.constant 0 : index
    %73 = vector.load %arg8[%c24_81, %c0_82] : memref<72x12xf32, #tpu.memory_space<vmem>>, vector<12x12xf32>
    %c24_83 = arith.constant 24 : index
    %c0_84 = arith.constant 0 : index
    %74 = vector.load %arg0[%c24_83, %c0_84] : memref<72x32xf32, #tpu.memory_space<vmem>>, vector<12x32xf32>
    %cst_85 = arith.constant dense<0.000000e+00> : vector<12x32xf32>
    %75 = tpu.matmul %73, %74, %cst_85 {dimension_numbers = #tpu.dot_dimension_numbers<[1], [0], [0], [1], [0, 0, 1, 1], [], []>} : vector<12x12xf32>, vector<12x32xf32>, vector<12x32xf32> -> vector<12x32xf32>
    %c24_86 = arith.constant 24 : index
    %c0_87 = arith.constant 0 : index
    %76 = vector.load %arg7[%c24_86, %c0_87] : memref<72x32xf32, #tpu.memory_space<vmem>>, vector<12x32xf32>
    tpu.vector_store %arg7[%c24_86, %c0_87], %75 {strides = array<i32>} : memref<72x32xf32, #tpu.memory_space<vmem>>, vector<12x32xf32>,
    %c36_88 = arith.constant 36 : index
    %c0_89 = arith.constant 0 : index
    %77 = vector.load %arg8[%c36_88, %c0_89] : memref<72x12xf32, #tpu.memory_space<vmem>>, vector<12x12xf32>
    %c36_90 = arith.constant 36 : index
    %c0_91 = arith.constant 0 : index
    %78 = vector.load %arg0[%c36_90, %c0_91] : memref<72x32xf32, #tpu.memory_space<vmem>>, vector<12x32xf32>
    %cst_92 = arith.constant dense<0.000000e+00> : vector<12x32xf32>
    %79 = tpu.matmul %77, %78, %cst_92 {dimension_numbers = #tpu.dot_dimension_numbers<[1], [0], [0], [1], [0, 0, 1, 1], [], []>} : vector<12x12xf32>, vector<12x32xf32>, vector<12x32xf32> -> vector<12x32xf32>
    %c36_93 = arith.constant 36 : index
    %c0_94 = arith.constant 0 : index
    %80 = vector.load %arg7[%c36_93, %c0_94] : memref<72x32xf32, #tpu.memory_space<vmem>>, vector<12x32xf32>
    tpu.vector_store %arg7[%c36_93, %c0_94], %79 {strides = array<i32>} : memref<72x32xf32, #tpu.memory_space<vmem>>, vector<12x32xf32>,
    %c48_95 = arith.constant 48 : index
    %c0_96 = arith.constant 0 : index
    %81 = vector.load %arg8[%c48_95, %c0_96] : memref<72x12xf32, #tpu.memory_space<vmem>>, vector<12x12xf32>
    %c48_97 = arith.constant 48 : index
    %c0_98 = arith.constant 0 : index
    %82 = vector.load %arg0[%c48_97, %c0_98] : memref<72x32xf32, #tpu.memory_space<vmem>>, vector<12x32xf32>
    %cst_99 = arith.constant dense<0.000000e+00> : vector<12x32xf32>
    %83 = tpu.matmul %81, %82, %cst_99 {dimension_numbers = #tpu.dot_dimension_numbers<[1], [0], [0], [1], [0, 0, 1, 1], [], []>} : vector<12x12xf32>, vector<12x32xf32>, vector<12x32xf32> -> vector<12x32xf32>
    %c48_100 = arith.constant 48 : index
    %c0_101 = arith.constant 0 : index
    %84 = vector.load %arg7[%c48_100, %c0_101] : memref<72x32xf32, #tpu.memory_space<vmem>>, vector<12x32xf32>
    tpu.vector_store %arg7[%c48_100, %c0_101], %83 {strides = array<i32>} : memref<72x32xf32, #tpu.memory_space<vmem>>, vector<12x32xf32>,
    %c60_102 = arith.constant 60 : index
    %c0_103 = arith.constant 0 : index
    %85 = vector.load %arg8[%c60_102, %c0_103] : memref<72x12xf32, #tpu.memory_space<vmem>>, vector<12x12xf32>
    %c60_104 = arith.constant 60 : index
    %c0_105 = arith.constant 0 : index
    %86 = vector.load %arg0[%c60_104, %c0_105] : memref<72x32xf32, #tpu.memory_space<vmem>>, vector<12x32xf32>
    %cst_106 = arith.constant dense<0.000000e+00> : vector<12x32xf32>
    %87 = tpu.matmul %85, %86, %cst_106 {dimension_numbers = #tpu.dot_dimension_numbers<[1], [0], [0], [1], [0, 0, 1, 1], [], []>} : vector<12x12xf32>, vector<12x32xf32>, vector<12x32xf32> -> vector<12x32xf32>
    %c60_107 = arith.constant 60 : index
    %c0_108 = arith.constant 0 : index
    %88 = vector.load %arg7[%c60_107, %c0_108] : memref<72x32xf32, #tpu.memory_space<vmem>>, vector<12x32xf32>
    tpu.vector_store %arg7[%c60_107, %c0_108], %87 {strides = array<i32>} : memref<72x32xf32, #tpu.memory_space<vmem>>, vector<12x32xf32>,
    %c0_109 = arith.constant 0 : index
    %c0_110 = arith.constant 0 : index
    %89 = vector.load %arg7[%c0_109, %c0_110] : memref<72x32xf32, #tpu.memory_space<vmem>>, vector<72x32xf32>
    %c0_111 = arith.constant 0 : index
    %c0_112 = arith.constant 0 : index
    %90 = vector.load %arg6[%c0_111, %c0_112] : memref<32x32xf32, #tpu.memory_space<vmem>>, vector<32x32xf32>
    %cst_113 = arith.constant dense<0.000000e+00> : vector<72x32xf32>
    %91 = tpu.matmul %89, %90, %cst_113 {dimension_numbers = #tpu.dot_dimension_numbers<[1], [0], [0], [1], [0, 0, 1, 1], [], []>} : vector<72x32xf32>, vector<32x32xf32>, vector<72x32xf32> -> vector<72x32xf32>
    %c0_114 = arith.constant 0 : index
    %c0_115 = arith.constant 0 : index
    %92 = vector.load %arg7[%c0_114, %c0_115] : memref<72x32xf32, #tpu.memory_space<vmem>>, vector<72x32xf32>
    tpu.vector_store %arg7[%c0_114, %c0_115], %91 {strides = array<i32>} : memref<72x32xf32, #tpu.memory_space<vmem>>, vector<72x32xf32>,
    return
  }
}

</mosaic_0001>

<bundles_post_ra>
// kernel: tpu_custom_call.1
= control target key start
LH: loop header
LB: loop body
LE: loop exit
PB: predicated region body
PF: predicated region fallthrough
CT: control target
= control target key end

     0   :  { %v2144_v0 = vmov 0.0   ;;  %vm2145_vm0 = vmmov 0   ;;  %vm48_vm1 = vcmask 261120   ;;  %vm186_vm2 = vcmask 130048   ;;  %s2842_s2 = inlined_call_operand.vmem [shape: f32[32,16], index: 2, kind: input, shape index: {}]   ;;  %s2843_s0 = inlined_call_operand.vmem [shape: f32[72,32], index: 0, kind: input, shape index: {}]   ;;  %s2844_s4 = inlined_call_operand.vmem [shape: f32[32,16], index: 4, kind: input, shape index: {}]   ;;  %s2845_s3 = inlined_call_operand.vmem [shape: f32[1,16], index: 3, kind: input, shape index: {}]   ;;  %s2846_s5 = inlined_call_operand.vmem [shape: f32[1,16], index: 5, kind: input, shape index: {}]   ;;  %s2847_s8 = inlined_call_operand.vmem [shape: f32[72,12], index: 8, kind: output, shape index: {1}]   ;;  %s2848_s1 = inlined_call_operand.vmem [shape: f32[72,12], index: 1, kind: input, shape index: {}]   ;;  %s2849_s6 = inlined_call_operand.vmem [shape: f32[32,32], index: 6, kind: input, shape index: {}]   ;;  %s2850_s7 = inlined_call_operand.vmem [shape: f32[72,32], index: 7, kind: output, shape index: {0}]  }
   0x1   :  { %2098 = vmatprep.subr.mxu1 %v2144_v0  ;;  %v40_v1 = vld [vmem:[%s2842_s2 + $0x18] sm:$0xff]  ;;  %v39_v2 = vld [vmem:[%s2842_s2 + $0x10] sm:$0xff]  ;;  %1929 = vmatprep.mubr.msk.f32.mxu1 %vm2145_vm0, %v2144_v0  ;;  %v38_v3 = vld [vmem:[%s2842_s2 + $0x8] sm:$0xff]  ;;  %vm421_vm3 = vcmask 93184   ;;  %vm419_vm4 = vcmask 97280   ;;  %vm1052_vm14 = vcmask 1043456  }
   0x2   :  { %2102 = vmatpush3.msra.mxu1 %v40_v1  ;;  %1909 = vmatprep.subr.mxu0 %v2144_v0  ;;  %v37_v4 = vld [vmem:[%s2842_s2] sm:$0xff]  ;;  %v199_v6 = vld [vmem:[%s2844_s4 + $0x18] sm:$0xff]  ;;  %v198_v7 = vld [vmem:[%s2844_s4 + $0x10] sm:$0xff]  ;;  %vm1132_vm15 = vcmask 257024  }
   0x3   :  { %2099 = vmatprep.subr.mxu1 %v2144_v0  ;;  %1910 = vmatpush3.msra.mxu0 %v40_v1  ;;  %v32_v5 = vld [vmem:[%s2843_s0 + $0x20] sm:$0xff]  ;;  %v33_v8 = vld [vmem:[%s2843_s0 + $0x28] sm:$0xff]  ;;  %v2245_v11 = vld [vmem:[%s2843_s0 + $0x30] sm:$0xff] }
   0x4   :  { %2103 = vmatpush3.msra.mxu1 %v39_v2  ;;  %1911 = vmatprep.subr.mxu0 %v2144_v0  ;;  %v197_v9 = vld [vmem:[%s2844_s4 + $0x8] sm:$0xff]  ;;  %v196_v10 = vld [vmem:[%s2844_s4] sm:$0xff]  ;;  %v35_v13 = vld [vmem:[%s2843_s0 + $0x38] sm:$0xff] }
   0x5   :  { %2100 = vmatprep.subr.mxu1 %v2144_v0  ;;  %1912 = vmatpush3.msra.mxu0 %v39_v2  ;;  %v2250_v12 = vld [vmem:[%s2843_s0] sm:$0xff]  ;;  %v29_v14 = vld [vmem:[%s2843_s0 + $0x8] sm:$0xff]  ;;  %v30_v16 = vld [vmem:[%s2843_s0 + $0x10] sm:$0xff] }
   0x6   :  { %2104 = vmatpush3.msra.mxu1 %v38_v3  ;;  %1913 = vmatprep.subr.mxu0 %v2144_v0  ;;  %v36_v15 = vld [vmem:[%s2843_s0 + $0x40] sm:$0xff]  ;;  %v2288_v17 = vld [vmem:[%s2843_s0 + $0x18] sm:$0xff] }
   0x7   :  { %2101 = vmatprep.subr.mxu1 %v2144_v0  ;;  %1914 = vmatpush3.msra.mxu0 %v38_v3  ;;  %v1751_v18 = vld [vmem:[%s2845_s3] ss:$0 sm:$0xff] }
   0x8   :  { %2105 = vmatpush3.msra.mxu1 %v37_v4  ;;  %1915 = vmatprep.subr.mxu0 %v2144_v0  ;;  %v2334_v44 = vld [vmem:[%s2846_s5] ss:$0 sm:$0xff] }
   0x9   :  { %1930 = vmatmul.mubr.msk.f32.vlgmr.msra.gmra.mxu1 %vm48_vm1, %v32_v5  ;;  %1944 = vmatprep.subr.mxu1 %v2144_v0 }
   0xa   :  { %1932 = vmatprep.mubr.msk.f32.mxu1 %vm2145_vm0, %v2144_v0  ;;  %1945 = vmatpush3.msra.mxu1 %v199_v6 }
   0xb   :  { %1946 = vmatprep.subr.mxu1 %v2144_v0  ;;  %1916 = vmatpush3.msra.mxu0 %v37_v4 }
   0xc   :  { %1947 = vmatpush3.msra.mxu1 %v198_v7  ;;  %1917 = vmatprep.mubr.msk.f32.mxu0 %vm2145_vm0, %v2144_v0 }
   0xd   :  { %1933 = vmatmul.mubr.msk.f32.gmra.mxu1 %vm48_vm1, %v33_v8  ;;  %1948 = vmatprep.subr.mxu1 %v2144_v0 }
   0xe   :  { %1935 = vmatprep.mubr.msk.f32.mxu1 %vm2145_vm0, %v2144_v0  ;;  %1949 = vmatpush3.msra.mxu1 %v197_v9 }
   0xf   :  { %1950 = vmatprep.subr.mxu1 %v2144_v0  ;;  %1918 = vmatmul.mubr.msk.f32.vlgmr.msra.gmra.mxu0 %vm48_vm1, %v2250_v12 }
  0x10   :  { %1951 = vmatpush3.msra.mxu1 %v196_v10  ;;  %1920 = vmatprep.mubr.msk.f32.mxu0 %vm2145_vm0, %v2144_v0 }
  0x11   :  { %1936 = vmatmul.mubr.msk.f32.gmra.mxu1 %vm48_vm1, %v2245_v11 }
  0x12   :  { %1938 = vmatprep.mubr.msk.f32.mxu1 %vm2145_vm0, %v2144_v0 }
  0x13   :  { %1921 = vmatmul.mubr.msk.f32.gmra.mxu0 %vm48_vm1, %v29_v14 }
  0x14   :  { %1923 = vmatprep.mubr.msk.f32.mxu0 %vm2145_vm0, %v2144_v0 }
  0x15   :  { %1939 = vmatmul.mubr.msk.f32.gmra.mxu1 %vm48_vm1, %v35_v13 }
  0x16   :  { %1941 = vmatprep.mubr.msk.f32.mxu1 %vm2145_vm0, %v2144_v0 }
  0x17   :  { %1924 = vmatmul.mubr.msk.f32.gmra.mxu0 %vm48_vm1, %v30_v16 }
  0x18   :  { %1926 = vmatprep.mubr.msk.f32.mxu0 %vm2145_vm0, %v2144_v0 }
  0x19   :  { %1942 = vmatmul.mubr.msk.f32.gmra.mxu1 %vm48_vm1, %v36_v15 }
  0x1a   :  { %1952 = vmatprep.mubr.msk.f32.mxu1 %vm2145_vm0, %v2144_v0 }
  0x1b   :  { %1927 = vmatmul.mubr.msk.f32.gmra.mxu0 %vm48_vm1, %v2288_v17 }
  0x1d   :  { %1953 = vmatmul.mubr.msk.f32.vlgmr.msra.gmra.mxu1 %vm48_vm1, %v2250_v12 }
  0x1e   :  { %1955 = vmatprep.mubr.msk.f32.mxu1 %vm2145_vm0, %v2144_v0 }
  0x21   :  { %1956 = vmatmul.mubr.msk.f32.gmra.mxu1 %vm48_vm1, %v29_v14 }
  0x22   :  { %1958 = vmatprep.mubr.msk.f32.mxu1 %vm2145_vm0, %v2144_v0 }
  0x25   :  { %1959 = vmatmul.mubr.msk.f32.gmra.mxu1 %vm48_vm1, %v30_v16 }
  0x26   :  { %1961 = vmatprep.mubr.msk.f32.mxu1 %vm2145_vm0, %v2144_v0 }
  0x29   :  { %1962 = vmatmul.mubr.msk.f32.gmra.mxu1 %vm48_vm1, %v2288_v17 }
  0x2a   :  { %1964 = vmatprep.mubr.msk.f32.mxu1 %vm2145_vm0, %v2144_v0 }
  0x2d   :  { %1965 = vmatmul.mubr.msk.f32.gmra.mxu1 %vm48_vm1, %v32_v5 }
  0x2e   :  { %1967 = vmatprep.mubr.msk.f32.mxu1 %vm2145_vm0, %v2144_v0 }
  0x31   :  { %1968 = vmatmul.mubr.msk.f32.gmra.mxu1 %vm48_vm1, %v33_v8 }
  0x32   :  { %1970 = vmatprep.mubr.msk.f32.mxu1 %vm2145_vm0, %v2144_v0 }
  0x35   :  { %1971 = vmatmul.mubr.msk.f32.gmra.mxu1 %vm48_vm1, %v2245_v11 }
  0x36   :  { %1973 = vmatprep.mubr.msk.f32.mxu1 %vm2145_vm0, %v2144_v0 }
  0x39   :  { %1974 = vmatmul.mubr.msk.f32.gmra.mxu1 %vm48_vm1, %v35_v13 }
  0x3a   :  { %1976 = vmatprep.mubr.msk.f32.mxu1 %vm2145_vm0, %v2144_v0 }
  0x3d   :  { %1977 = vmatmul.mubr.msk.f32.gmra.mxu1 %vm48_vm1, %v36_v15 }
  0xc9   :  { %v162_v19 = vpop.f32.mrf.mxu1 }
  0xca   :  { %v163_v20 = vadd.f32 %v1751_v18, %v162_v19 }
  0xcb   :  { %v1931_v21 = vpop.f32.mrf.mxu1 }
  0xcc   :  { %191 = vst.msk [vmem:[#allocation2 + $0x20] sm:$0xff] %vm186_vm2, %v163_v20 }
  0xcd   :  { %v167_v22 = vpop.f32.mrf.mxu1 }
  0xce   :  { %v168_v23 = vadd.f32 %v1751_v18, %v167_v22 }
  0xcf   :  { %v1934_v24 = vpop.f32.mrf.mxu1  ;;  %v142_v25 = vpop.f32.mrf.mxu0 }
  0xd0   :  { %192 = vst.msk [vmem:[#allocation2 + $0x28] sm:$0xff] %vm186_vm2, %v168_v23  ;;  %v143_v26 = vadd.f32 %v1751_v18, %v142_v25 }
  0xd1   :  { %v172_v27 = vpop.f32.mrf.mxu1  ;;  %v1919_v28 = vpop.f32.mrf.mxu0 }
  0xd2   :  { %v173_v29 = vadd.f32 %v1751_v18, %v172_v27  ;;  %187 = vst.msk [vmem:[#allocation2] sm:$0xff] %vm186_vm2, %v143_v26 }
  0xd3   :  { %v1937_v30 = vpop.f32.mrf.mxu1  ;;  %v147_v31 = vpop.f32.mrf.mxu0  ;;  %v519_v27 = vld [vmem:[#allocation2 + $0x20] sm:$0xf] }
  0xd4   :  { %193 = vst.msk [vmem:[#allocation2 + $0x30] sm:$0xff] %vm186_vm2, %v173_v29  ;;  %v148_v32 = vadd.f32 %v1751_v18, %v147_v31 }
  0xd5   :  { %v177_v33 = vpop.f32.mrf.mxu1  ;;  %v1922_v34 = vpop.f32.mrf.mxu0 }
  0xd6   :  { %v178_v35 = vadd.f32 %v1751_v18, %v177_v33  ;;  %188 = vst.msk [vmem:[#allocation2 + $0x8] sm:$0xff] %vm186_vm2, %v148_v32 }
  0xd7   :  { %v1940_v36 = vpop.f32.mrf.mxu1  ;;  %v152_v37 = vpop.f32.mrf.mxu0  ;;  %v614_v30 = vld [vmem:[#allocation2 + $0x2c] sm:$0xf] }
  0xd8   :  { %194 = vst.msk [vmem:[#allocation2 + $0x38] sm:$0xff] %vm186_vm2, %v178_v35  ;;  %v153_v38 = vadd.f32 %v1751_v18, %v152_v37 }
  0xd9   :  { %v182_v39 = vpop.f32.mrf.mxu1  ;;  %v1925_v40 = vpop.f32.mrf.mxu0  ;;  %v326_v41 = vld [vmem:[#allocation2] sm:$0xff] }
  0xda   :  { %v183_v42 = vadd.f32 %v1751_v18, %v182_v39  ;;  %189 = vst.msk [vmem:[#allocation2 + $0x10] sm:$0xff] %vm186_vm2, %v153_v38  ;;  %1983 = vmatprep.mubr.msk.f32.mxu0 %vm186_vm2, %v326_v41 }
  0xdb   :  { %v1943_v43 = vpop.f32.mrf.mxu1  ;;  %v157_v45 = vpop.f32.mrf.mxu0  ;;  %v708_v29 = vld [vmem:[#allocation2 + $0x30] sm:$0xff] }
  0xdc   :  { %195 = vst.msk [vmem:[#allocation2 + $0x40] sm:$0xff] %vm186_vm2, %v183_v42  ;;  %v158_v46 = vadd.f32 %v1751_v18, %v157_v45  ;;  %v613_v18 = vld [vmem:[#allocation2 + $0x24] sm:$0xff] }
  0xdd   :  { %v273_v47 = vpop.f32.mrf.mxu1  ;;  %v1928_v48 = vpop.f32.mrf.mxu0  ;;  %v327_v6 = vld [vmem:[#allocation2 + $0x8] sm:$0xf] }
  0xde   :  { %v274_v49 = vadd.f32 %v2334_v44, %v273_v47  ;;  %190 = vst.msk [vmem:[#allocation2 + $0x18] sm:$0xff] %vm186_vm2, %v158_v46  ;;  %v898_v46 = vld [vmem:[%s2848_s1] sm:$0xff]  ;;  %v900_v47 = vld [vmem:[%s2848_s1 + $0x10] sm:$0xff]  ;;  %v899_v48 = vld [vmem:[%s2848_s1 + $0x8] sm:$0xff] }
  0xdf   :  { %v1954_v50 = vpop.f32.mrf.mxu1  ;;  %v709_v36 = vld [vmem:[#allocation2 + $0x38] sm:$0xf]  ;;  %vm907_vm5 = vcmp.gt.f32.partialorder %v898_v46, 0.5  ;;  %vm909_vm6 = vcmp.gt.f32.partialorder %v900_v47, 0.5  ;;  %vm908_vm7 = vcmp.gt.f32.partialorder %v899_v48, 0.5 }
  0xe0   :  { %317 = vst.msk [vmem:[#allocation3] sm:$0xff] %vm186_vm2, %v274_v49 }
  0xe1   :  { %v278_v51 = vpop.f32.mrf.mxu1  ;;  %v423_v52 = vld [vmem:[#allocation2 + $0xc] sm:$0xff]  ;;  %v424_v13 = vld [vmem:[#allocation2 + $0x14] sm:$0xf] }
  0xe2   :  { %v279_v53 = vadd.f32 %v2334_v44, %v278_v51  ;;  %1990 = vmatprep.mubr.msk.f32.mxu1 %vm186_vm2, %v423_v52 }
  0xe3   :  { %v1957_v54 = vpop.f32.mrf.mxu1  ;;  %v803_v32 = vld [vmem:[#allocation2 + $0x3c] sm:$0xff]  ;;  %v804_v37 = vld [vmem:[#allocation2 + $0x44] sm:$0xf] }
  0xe4   :  { %318 = vst.msk [vmem:[#allocation3 + $0x8] sm:$0xff] %vm186_vm2, %v279_v53 }
  0xe5   :  { %v283_v55 = vpop.f32.mrf.mxu1  ;;  %v518_v8 = vld [vmem:[#allocation2 + $0x18] sm:$0xff] }
  0xe6   :  { %v284_v56 = vadd.f32 %v2334_v44, %v283_v55 }
  0xe7   :  { %v1960_v57 = vpop.f32.mrf.mxu1  ;;  %v328_v63 = vld [vmem:[#allocation3] sm:$0xff] }
  0xe8   :  { %319 = vst.msk [vmem:[#allocation3 + $0x10] sm:$0xff] %vm186_vm2, %v284_v56 }
  0xe9   :  { %v288_v58 = vpop.f32.mrf.mxu1 }
  0xea   :  { %v289_v59 = vadd.f32 %v2334_v44, %v288_v58 }
  0xeb   :  { %v1963_v60 = vpop.f32.mrf.mxu1  ;;  %v329_v61 = vld [vmem:[#allocation3 + $0x8] sm:$0xf] }
  0xec   :  { %320 = vst.msk [vmem:[#allocation3 + $0x18] sm:$0xff] %vm186_vm2, %v289_v59  ;;  %1979 = vmatprep.subr.msk.mxu0 %vm186_vm2, %v329_v61 }
  0xed   :  { %v293_v62 = vpop.f32.mrf.mxu1  ;;  %1980 = vmatpush3.xpose.msk.msra.mxu0 %vm186_vm2, %v329_v61 }
  0xee   :  { %v294_v1 = vadd.f32 %v2334_v44, %v293_v62  ;;  %1981 = vmatprep.subr.msk.mxu0 %vm186_vm2, %v328_v63 }
  0xef   :  { %v1966_v2 = vpop.f32.mrf.mxu1  ;;  %v426_v3 = vld [vmem:[#allocation3 + $0x14] sm:$0xf]  ;;  %v425_v5 = vld [vmem:[#allocation3 + $0xc] sm:$0xff] }
  0xf0   :  { %321 = vst.msk [vmem:[#allocation3 + $0x20] sm:$0xff] %vm186_vm2, %v294_v1  ;;  %1986 = vmatprep.subr.msk.mxu1 %vm186_vm2, %v426_v3 }
  0xf1   :  { %v298_v4 = vpop.f32.mrf.mxu1  ;;  %1982 = vmatpush3.xpose.msk.msra.mxu0 %vm186_vm2, %v328_v63  ;;  %1987 = vmatpush3.xpose.msk.msra.mxu1 %vm186_vm2, %v426_v3  ;;  %v901_v3 = vld [vmem:[%s2848_s1 + $0x18] sm:$0xff] }
  0xf2   :  { %v299_v7 = vadd.f32 %v2334_v44, %v298_v4  ;;  %1988 = vmatprep.subr.msk.mxu1 %vm186_vm2, %v425_v5  ;;  %vm910_vm8 = vcmp.gt.f32.partialorder %v901_v3, 0.5  ;;  %v903_v4 = vld [vmem:[%s2848_s1 + $0x28] sm:$0xff] }
  0xf3   :  { %v1969_v9 = vpop.f32.mrf.mxu1  ;;  %v520_v20 = vld [vmem:[#allocation3 + $0x18] sm:$0xff]  ;;  %vm912_vm9 = vcmp.gt.f32.partialorder %v903_v4, 0.5 }
  0xf4   :  { %322 = vst.msk [vmem:[#allocation3 + $0x28] sm:$0xff] %vm186_vm2, %v299_v7  ;;  %1984 = vmatmul.mubr.msk.f32.vlgmr.msra.gmra.mxu0 %vm186_vm2, %v327_v6 }
  0xf5   :  { %v303_v10 = vpop.f32.mrf.mxu1  ;;  %1989 = vmatpush3.xpose.msk.msra.mxu1 %vm186_vm2, %v425_v5  ;;  %1997 = vmatprep.mubr.msk.f32.mxu0 %vm186_vm2, %v518_v8  ;;  %v902_v5 = vld [vmem:[%s2848_s1 + $0x20] sm:$0xff] }
  0xf6   :  { %v304_v14 = vadd.f32 %v2334_v44, %v303_v10  ;;  %vm911_vm10 = vcmp.gt.f32.partialorder %v902_v5, 0.5 }
  0xf7   :  { %v1972_v15 = vpop.f32.mrf.mxu1  ;;  %v521_v16 = vld [vmem:[#allocation3 + $0x20] sm:$0xf] }
  0xf8   :  { %323 = vst.msk [vmem:[#allocation3 + $0x30] sm:$0xff] %vm186_vm2, %v304_v14  ;;  %1991 = vmatmul.mubr.msk.f32.vlgmr.msra.gmra.mxu1 %vm186_vm2, %v424_v13  ;;  %1993 = vmatprep.subr.msk.mxu0 %vm186_vm2, %v521_v16 }
  0xf9   :  { %v308_v19 = vpop.f32.mrf.mxu1  ;;  %1994 = vmatpush3.xpose.msk.msra.mxu0 %vm186_vm2, %v521_v16  ;;  %2004 = vmatprep.mubr.msk.f32.mxu1 %vm186_vm2, %v613_v18 }
  0xfa   :  { %v309_v21 = vadd.f32 %v2334_v44, %v308_v19  ;;  %1995 = vmatprep.subr.msk.mxu0 %vm186_vm2, %v520_v20 }
  0xfb   :  { %v1975_v22 = vpop.f32.mrf.mxu1  ;;  %v616_v23 = vld [vmem:[#allocation3 + $0x2c] sm:$0xf]  ;;  %v615_v25 = vld [vmem:[#allocation3 + $0x24] sm:$0xff] }
  0xfc   :  { %324 = vst.msk [vmem:[#allocation3 + $0x38] sm:$0xff] %vm186_vm2, %v309_v21  ;;  %2000 = vmatprep.subr.msk.mxu1 %vm186_vm2, %v616_v23 }
  0xfd   :  { %v313_v24 = vpop.f32.mrf.mxu1  ;;  %1996 = vmatpush3.xpose.msk.msra.mxu0 %vm186_vm2, %v520_v20  ;;  %2001 = vmatpush3.xpose.msk.msra.mxu1 %vm186_vm2, %v616_v23 }
  0xfe   :  { %v314_v26 = vadd.f32 %v2334_v44, %v313_v24  ;;  %2002 = vmatprep.subr.msk.mxu1 %vm186_vm2, %v615_v25 }
  0xff   :  { %v1978_v28 = vpop.f32.mrf.mxu1  ;;  %v710_v33 = vld [vmem:[#allocation3 + $0x30] sm:$0xff] }
 0x100   :  { %325 = vst.msk [vmem:[#allocation3 + $0x40] sm:$0xff] %vm186_vm2, %v314_v26  ;;  %1998 = vmatmul.mubr.msk.f32.vlgmr.msra.gmra.mxu0 %vm186_vm2, %v519_v27  ;;  %v904_v26 = vld [vmem:[%s2848_s1 + $0x30] sm:$0xff]  ;;  %v905_v27 = vld [vmem:[%s2848_s1 + $0x38] sm:$0xff]  ;;  %v906_v28 = vld [vmem:[%s2848_s1 + $0x40] sm:$0xff] }
 0x101   :  { %2003 = vmatpush3.xpose.msk.msra.mxu1 %vm186_vm2, %v615_v25  ;;  %2011 = vmatprep.mubr.msk.f32.mxu0 %vm186_vm2, %v708_v29  ;;  %vm913_vm11 = vcmp.gt.f32.partialorder %v904_v26, 0.5  ;;  %vm914_vm12 = vcmp.gt.f32.partialorder %v905_v27, 0.5  ;;  %vm915_vm13 = vcmp.gt.f32.partialorder %v906_v28, 0.5  ;;  %v1227_v26 = vld [vmem:[%s2843_s0 + $0x20] sm:$0xf] }
 0x102   :  { %v1317_v27 = vld [vmem:[%s2843_s0 + $0x2c] sm:$0xf] }
 0x103   :  { %v711_v31 = vld [vmem:[#allocation3 + $0x38] sm:$0xf] }
 0x104   :  { %2005 = vmatmul.mubr.msk.f32.vlgmr.msra.gmra.mxu1 %vm186_vm2, %v614_v30  ;;  %2007 = vmatprep.subr.msk.mxu0 %vm186_vm2, %v711_v31 }
 0x105   :  { %2008 = vmatpush3.xpose.msk.msra.mxu0 %vm186_vm2, %v711_v31  ;;  %2018 = vmatprep.mubr.msk.f32.mxu1 %vm186_vm2, %v803_v32 }
 0x106   :  { %2009 = vmatprep.subr.msk.mxu0 %vm186_vm2, %v710_v33 }
 0x107   :  { %v806_v34 = vld [vmem:[#allocation3 + $0x44] sm:$0xf]  ;;  %v805_v35 = vld [vmem:[#allocation3 + $0x3c] sm:$0xff] }
 0x108   :  { %2014 = vmatprep.subr.msk.mxu1 %vm186_vm2, %v806_v34 }
 0x109   :  { %2010 = vmatpush3.xpose.msk.msra.mxu0 %vm186_vm2, %v710_v33  ;;  %2015 = vmatpush3.xpose.msk.msra.mxu1 %vm186_vm2, %v806_v34 }
 0x10a   :  { %2016 = vmatprep.subr.msk.mxu1 %vm186_vm2, %v805_v35 }
 0x10c   :  { %2012 = vmatmul.mubr.msk.f32.vlgmr.msra.gmra.mxu0 %vm186_vm2, %v709_v36 }
 0x10d   :  { %2017 = vmatpush3.xpose.msk.msra.mxu1 %vm186_vm2, %v805_v35 }
 0x110   :  { %2019 = vmatmul.mubr.msk.f32.vlgmr.msra.gmra.mxu1 %vm186_vm2, %v804_v37 }
 0x1b4   :  { %v1985_v38 = vpop.f32.mrf.mxu0 }
 0x1b5   :  { %v418_v39 = vmul.f32 0.25, %v1985_v38 }
 0x1b6   :  { %v408_v40 = vpop.f32.mrf.mxu0 }
 0x1b7   :  { %422 = vst.msk [vmem:[%s2847_s8 + $0x8] sm:$0xf] %vm421_vm3, %v418_v39  ;;  %v417_v41 = vmul.f32 0.25, %v408_v40 }
 0x1b8   :  { %v1992_v42 = vpop.f32.mrf.mxu1 }
 0x1b9   :  { %420 = vst.msk [vmem:[%s2847_s8] sm:$0xff] %vm419_vm4, %v417_v41  ;;  %v515_v43 = vmul.f32 0.25, %v1992_v42 }
 0x1ba   :  { %v505_v44 = vpop.f32.mrf.mxu1 }
 0x1bb   :  { %517 = vst.msk [vmem:[%s2847_s8 + $0x14] sm:$0xf] %vm421_vm3, %v515_v43  ;;  %v514_v45 = vmul.f32 0.25, %v505_v44 }
 0x1bd   :  { %516 = vst.msk [vmem:[%s2847_s8 + $0xc] sm:$0xff] %vm419_vm4, %v514_v45 }
 0x1c0   :  { %v1999_v49 = vpop.f32.mrf.mxu0  ;;  %v916_v50 = vld [vmem:[%s2847_s8] sm:$0xff] }
 0x1c1   :  { %v610_v51 = vmul.f32 0.25, %v1999_v49  ;;  %v2419_v52 = vsel %vm907_vm5, -inf, %v916_v50 }
 0x1c2   :  { %v600_v53 = vpop.f32.mrf.mxu0  ;;  %v934_v54 = vsel %vm419_vm4, %v2419_v52, -inf }
 0x1c3   :  { %612 = vst.msk [vmem:[%s2847_s8 + $0x20] sm:$0xf] %vm421_vm3, %v610_v51  ;;  %v609_v55 = vmul.f32 0.25, %v600_v53  ;;  %935 = vmax.xlane.f32.xlu0 %v934_v54 }
 0x1c4   :  { %v2006_v56 = vpop.f32.mrf.mxu1  ;;  %v918_v57 = vld [vmem:[%s2847_s8 + $0x10] sm:$0xff]  ;;  %v917_v58 = vld [vmem:[%s2847_s8 + $0x8] sm:$0xff] }
 0x1c5   :  { %611 = vst.msk [vmem:[%s2847_s8 + $0x18] sm:$0xff] %vm419_vm4, %v609_v55  ;;  %v705_v59 = vmul.f32 0.25, %v2006_v56  ;;  %v2437_v60 = vsel %vm909_vm6, -inf, %v918_v57  ;;  %v2439_v61 = vsel %vm908_vm7, -inf, %v917_v58 }
 0x1c6   :  { %v695_v62 = vpop.f32.mrf.mxu1  ;;  %v940_v63 = vsel %vm419_vm4, %v2437_v60, -inf  ;;  %v937_v1 = vsel %vm419_vm4, %v2439_v61, -inf }
 0x1c7   :  { %707 = vst.msk [vmem:[%s2847_s8 + $0x2c] sm:$0xf] %vm421_vm3, %v705_v59  ;;  %v704_v2 = vmul.f32 0.25, %v695_v62  ;;  %941 = vmax.xlane.f32.xlu1 %v940_v63  ;;  %938 = vmax.xlane.f32.xlu0 %v937_v1 }
 0x1c9   :  { %706 = vst.msk [vmem:[%s2847_s8 + $0x24] sm:$0xff] %vm419_vm4, %v704_v2 }
 0x1cc   :  { %v2013_v6 = vpop.f32.mrf.mxu0  ;;  %v919_v7 = vld [vmem:[%s2847_s8 + $0x18] sm:$0xff] }
 0x1cd   :  { %v800_v8 = vmul.f32 0.25, %v2013_v6  ;;  %v928_v9 = vsel %vm910_vm8, -inf, %v919_v7 }
 0x1ce   :  { %v790_v10 = vpop.f32.mrf.mxu0  ;;  %v943_v13 = vsel %vm419_vm4, %v928_v9, -inf }
 0x1cf   :  { %802 = vst.msk [vmem:[%s2847_s8 + $0x38] sm:$0xf] %vm421_vm3, %v800_v8  ;;  %v799_v14 = vmul.f32 0.25, %v790_v10  ;;  %944 = vmax.xlane.f32.xlu1 %v943_v13 }
 0x1d0   :  { %v2020_v15 = vpop.f32.mrf.mxu1  ;;  %v921_v16 = vld [vmem:[%s2847_s8 + $0x28] sm:$0xff]  ;;  %v920_v18 = vld [vmem:[%s2847_s8 + $0x20] sm:$0xff] }
 0x1d1   :  { %801 = vst.msk [vmem:[%s2847_s8 + $0x30] sm:$0xff] %vm419_vm4, %v799_v14  ;;  %v895_v19 = vmul.f32 0.25, %v2020_v15  ;;  %v930_v20 = vsel %vm912_vm9, -inf, %v921_v16  ;;  %v929_v21 = vsel %vm911_vm10, -inf, %v920_v18 }
 0x1d2   :  { %v885_v22 = vpop.f32.mrf.mxu1  ;;  %v949_v23 = vsel %vm419_vm4, %v930_v20, -inf  ;;  %v946_v24 = vsel %vm419_vm4, %v929_v21, -inf }
 0x1d3   :  { %897 = vst.msk [vmem:[%s2847_s8 + $0x44] sm:$0xf] %vm421_vm3, %v895_v19  ;;  %v894_v25 = vmul.f32 0.25, %v885_v22  ;;  %950 = vmax.xlane.f32.xlu1 %v949_v23  ;;  %947 = vmax.xlane.f32.xlu0 %v946_v24  ;;  %v1045_v23 = vld [vmem:[%s2843_s0 + $0x8] sm:$0xf] }
 0x1d4   :  { %2021 = vmatprep.subr.msk.mxu0 %vm1052_vm14, %v1045_v23  ;;  %v1137_v24 = vld [vmem:[%s2843_s0 + $0x14] sm:$0xf] }
 0x1d5   :  { %896 = vst.msk [vmem:[%s2847_s8 + $0x3c] sm:$0xff] %vm419_vm4, %v894_v25  ;;  %2022 = vmatpush3.msk.msra.mxu0 %vm1052_vm14, %v1045_v23  ;;  %2028 = vmatprep.subr.msk.mxu1 %vm1052_vm14, %v1137_v24  ;;  %v1136_v25 = vld [vmem:[%s2843_s0 + $0xc] sm:$0xff] }
 0x1d6   :  { %2023 = vmatprep.subr.mxu0 %v2250_v12  ;;  %2029 = vmatpush3.msk.msra.mxu1 %vm1052_vm14, %v1137_v24 }
 0x1d7   :  { %2024 = vmatpush3.msra.mxu0 %v2250_v12  ;;  %2030 = vmatprep.subr.mxu1 %v1136_v25 }
 0x1d8   :  { %v922_v29 = vld [vmem:[%s2847_s8 + $0x30] sm:$0xff]  ;;  %2031 = vmatpush3.msra.mxu1 %v1136_v25  ;;  %2035 = vmatprep.subr.msk.mxu0 %vm1052_vm14, %v1227_v26 }
 0x1d9   :  { %v931_v30 = vsel %vm913_vm11, -inf, %v922_v29  ;;  %2042 = vmatprep.subr.msk.mxu1 %vm1052_vm14, %v1317_v27 }
 0x1da   :  { %v952_v31 = vsel %vm419_vm4, %v931_v30, -inf }
 0x1db   :  { %953 = vmax.xlane.f32.xlu0 %v952_v31 }
 0x1dc   :  { %v923_v32 = vld [vmem:[%s2847_s8 + $0x38] sm:$0xff]  ;;  %v924_v33 = vld [vmem:[%s2847_s8 + $0x40] sm:$0xff] }
 0x1dd   :  { %v932_v34 = vsel %vm914_vm12, -inf, %v923_v32  ;;  %v933_v35 = vsel %vm915_vm13, -inf, %v924_v33 }
 0x1de   :  { %v955_v36 = vsel %vm419_vm4, %v932_v34, -inf  ;;  %v958_v37 = vsel %vm419_vm4, %v933_v35, -inf }
 0x1df   :  { %956 = vmax.xlane.f32.xlu1 %v955_v36  ;;  %959 = vmax.xlane.f32.xlu0 %v958_v37 }
 0x24c   :  { %v936_v38 = vpop.xlane.xlu0 %935 }
 0x24d   :  { %v961_v39 = vsub.f32 %v2419_v52, %v936_v38 }
 0x24f   :  { %v970_v40 = vmul.f32 1.442695, %v961_v39 }
 0x250   :  { %v942_v41 = vpop.xlane.xlu1 %941  ;;  %v939_v42 = vpop.xlane.xlu0 %938 }
 0x251   :  { %2108 = vpow2.f32 %v970_v40  ;;  %v963_v43 = vsub.f32 %v2437_v60, %v942_v41  ;;  %v962_v44 = vsub.f32 %v2439_v61, %v939_v42 }
 0x253   :  { %v974_v45 = vmul.f32 1.442695, %v963_v43  ;;  %v972_v46 = vmul.f32 1.442695, %v962_v44 }
 0x255   :  { %2110 = vpow2.f32 %v974_v45 }
 0x256   :  { %2112 = vpow2.f32 %v972_v46 }
 0x258   :  { %v945_v47 = vpop.xlane.xlu1 %944 }
 0x259   :  { %v964_v48 = vsub.f32 %v928_v9, %v945_v47 }
 0x25b   :  { %v976_v49 = vmul.f32 1.442695, %v964_v48 }
 0x25c   :  { %v951_v50 = vpop.xlane.xlu1 %950  ;;  %v948_v51 = vpop.xlane.xlu0 %947 }
 0x25d   :  { %2114 = vpow2.f32 %v976_v49  ;;  %v966_v53 = vsub.f32 %v930_v20, %v951_v50  ;;  %v965_v52 = vsub.f32 %v929_v21, %v948_v51  ;;  %v1316_v49 = vld [vmem:[%s2843_s0 + $0x24] sm:$0xff] }
 0x25e   :  { %v2514_v54 = vpop.eup %2108 }
 0x25f   :  { %v980_v55 = vmul.f32 1.442695, %v966_v53  ;;  %v978_v56 = vmul.f32 1.442695, %v965_v52  ;;  %v988_v57 = vsel %vm419_vm4, %v2514_v54, 0.0 }
 0x260   :  { %989 = vadd.xlane.f32.xlu1 %v988_v57  ;;  %v1407_v53 = vld [vmem:[%s2843_s0 + $0x38] sm:$0xf] }
 0x261   :  { %2116 = vpow2.f32 %v980_v55 }
 0x262   :  { %v2518_v58 = vpop.eup %2110  ;;  %2118 = vpow2.f32 %v978_v56 }
 0x263   :  { %v2520_v59 = vpop.eup %2112  ;;  %v994_v60 = vsel %vm419_vm4, %v2518_v58, 0.0 }
 0x264   :  { %995 = vadd.xlane.f32.xlu1 %v994_v60  ;;  %v991_v61 = vsel %vm419_vm4, %v2520_v59, 0.0  ;;  %v954_v62 = vpop.xlane.xlu0 %953 }
 0x265   :  { %992 = vadd.xlane.f32.xlu0 %v991_v61  ;;  %v967_v63 = vsub.f32 %v931_v30, %v954_v62  ;;  %v1496_v61 = vld [vmem:[%s2843_s0 + $0x3c] sm:$0xff] }
 0x267   :  { %v982_v1 = vmul.f32 1.442695, %v967_v63 }
 0x268   :  { %v957_v2 = vpop.xlane.xlu1 %956  ;;  %v960_v3 = vpop.xlane.xlu0 %959 }
 0x269   :  { %2120 = vpow2.f32 %v982_v1  ;;  %v968_v4 = vsub.f32 %v932_v34, %v957_v2  ;;  %v969_v5 = vsub.f32 %v933_v35, %v960_v3 }
 0x26a   :  { %v2526_v6 = vpop.eup %2114 }
 0x26b   :  { %v984_v7 = vmul.f32 1.442695, %v968_v4  ;;  %v986_v8 = vmul.f32 1.442695, %v969_v5  ;;  %v997_v9 = vsel %vm419_vm4, %v2526_v6, 0.0  ;;  %v1596_v5 = vld [vmem:[%s2849_s6 + $0x18] sm:$0xff] }
 0x26c   :  { %998 = vadd.xlane.f32.xlu0 %v997_v9 }
 0x26d   :  { %2122 = vpow2.f32 %v984_v7  ;;  %v1594_v7 = vld [vmem:[%s2849_s6 + $0x8] sm:$0xff] }
 0x26e   :  { %v2530_v10 = vpop.eup %2116  ;;  %2124 = vpow2.f32 %v986_v8  ;;  %v1593_v8 = vld [vmem:[%s2849_s6] sm:$0xff] }
 0x26f   :  { %v2532_v13 = vpop.eup %2118  ;;  %v1003_v14 = vsel %vm419_vm4, %v2530_v10, 0.0 }
 0x270   :  { %1004 = vadd.xlane.f32.xlu0 %v1003_v14  ;;  %v1000_v15 = vsel %vm419_vm4, %v2532_v13, 0.0 }
 0x271   :  { %1001 = vadd.xlane.f32.xlu1 %v1000_v15 }
 0x276   :  { %v2538_v16 = vpop.eup %2120 }
 0x277   :  { %v1006_v18 = vsel %vm419_vm4, %v2538_v16, 0.0 }
 0x278   :  { %1007 = vadd.xlane.f32.xlu1 %v1006_v18 }
 0x27a   :  { %v2542_v19 = vpop.eup %2122 }
 0x27b   :  { %v2544_v20 = vpop.eup %2124  ;;  %v1009_v21 = vsel %vm419_vm4, %v2542_v19, 0.0 }
 0x27c   :  { %1010 = vadd.xlane.f32.xlu0 %v1009_v21  ;;  %v1012_v22 = vsel %vm419_vm4, %v2544_v20, 0.0 }
 0x27d   :  { %1013 = vadd.xlane.f32.xlu1 %v1012_v22 }
 0x2e9   :  { %v990_v28 = vpop.xlane.xlu1 %989 }
 0x2ea   :  { %2126 = vrcp.f32 %v990_v28 }
 0x2ed   :  { %v996_v29 = vpop.xlane.xlu1 %995 }
 0x2ee   :  { %2128 = vrcp.f32 %v996_v29  ;;  %v993_v30 = vpop.xlane.xlu0 %992 }
 0x2ef   :  { %2130 = vrcp.f32 %v993_v30 }
 0x2f5   :  { %v999_v12 = vpop.xlane.xlu0 %998 }
 0x2f6   :  { %2132 = vrcp.f32 %v999_v12 }
 0x2f7   :  { %v2127_v31 = vpop.eup %2126 }
 0x2f8   :  { %v1016_v32 = vmul.f32 %v2127_v31, %v2514_v54  ;;  %v1497_v54 = vld [vmem:[%s2843_s0 + $0x44] sm:$0xf] }
 0x2f9   :  { %v1005_v33 = vpop.xlane.xlu0 %1004 }
 0x2fa   :  { %1033 = vst.msk [vmem:[%s2847_s8] sm:$0xff] %vm419_vm4, %v1016_v32  ;;  %v1002_v34 = vpop.xlane.xlu1 %1001  ;;  %2134 = vrcp.f32 %v1005_v33 }
 0x2fb   :  { %v2129_v35 = vpop.eup %2128  ;;  %2136 = vrcp.f32 %v1002_v34 }
 0x2fc   :  { %v2131_v36 = vpop.eup %2130  ;;  %v1020_v37 = vmul.f32 %v2129_v35, %v2518_v58 }
 0x2fd   :  { %v1018_v38 = vmul.f32 %v2131_v36, %v2520_v59 }
 0x2fe   :  { %1035 = vst.msk [vmem:[%s2847_s8 + $0x10] sm:$0xff] %vm419_vm4, %v1020_v37 }
 0x2ff   :  { %1034 = vst.msk [vmem:[%s2847_s8 + $0x8] sm:$0xff] %vm419_vm4, %v1018_v38 }
 0x301   :  { %v1008_v39 = vpop.xlane.xlu1 %1007  ;;  %v1042_v40 = vld [vmem:[%s2847_s8] sm:$0xff] }
 0x302   :  { %2138 = vrcp.f32 %v1008_v39  ;;  %2025 = vmatprep.mubr.msk.f32.mxu0 %vm419_vm4, %v1042_v40 }
 0x303   :  { %v2133_v41 = vpop.eup %2132 }
 0x304   :  { %v1022_v42 = vmul.f32 %v2133_v41, %v2526_v6  ;;  %v1595_v6 = vld [vmem:[%s2849_s6 + $0x10] sm:$0xff] }
 0x305   :  { %v1011_v43 = vpop.xlane.xlu0 %1010  ;;  %v1135_v44 = vld [vmem:[%s2847_s8 + $0x14] sm:$0xf] }
 0x306   :  { %1036 = vst.msk [vmem:[%s2847_s8 + $0x18] sm:$0xff] %vm419_vm4, %v1022_v42  ;;  %v1014_v45 = vpop.xlane.xlu1 %1013  ;;  %2140 = vrcp.f32 %v1011_v43  ;;  %v1043_v46 = vld [vmem:[%s2847_s8 + $0x8] sm:$0xf]  ;;  %v1134_v47 = vld [vmem:[%s2847_s8 + $0xc] sm:$0xff] }
 0x307   :  { %v2135_v48 = vpop.eup %2134  ;;  %2142 = vrcp.f32 %v1014_v45  ;;  %2026 = vmatmul.mubr.msk.f32.vlgmr.msra.gmra.mxu0 %vm419_vm4, %v1043_v46  ;;  %2032 = vmatprep.mubr.msk.f32.mxu1 %vm419_vm4, %v1134_v47 }
 0x308   :  { %v2137_v50 = vpop.eup %2136  ;;  %v1026_v51 = vmul.f32 %v2135_v48, %v2530_v10  ;;  %2033 = vmatmul.mubr.msk.f32.vlgmr.msra.gmra.mxu1 %vm419_vm4, %v1135_v44  ;;  %2036 = vmatpush3.msk.msra.mxu0 %vm1052_vm14, %v1227_v26 }
 0x309   :  { %v1024_v52 = vmul.f32 %v2137_v50, %v2532_v13  ;;  %2037 = vmatprep.subr.mxu0 %v2288_v17  ;;  %2043 = vmatpush3.msk.msra.mxu1 %vm1052_vm14, %v1317_v27 }
 0x30a   :  { %1038 = vst.msk [vmem:[%s2847_s8 + $0x28] sm:$0xff] %vm419_vm4, %v1026_v51  ;;  %2038 = vmatpush3.msra.mxu0 %v2288_v17  ;;  %2044 = vmatprep.subr.mxu1 %v1316_v49 }
 0x30b   :  { %1037 = vst.msk [vmem:[%s2847_s8 + $0x20] sm:$0xff] %vm419_vm4, %v1024_v52  ;;  %2045 = vmatpush3.msra.mxu1 %v1316_v49  ;;  %2049 = vmatprep.subr.msk.mxu0 %vm1052_vm14, %v1407_v53 }
 0x30c   :  { %2056 = vmatprep.subr.msk.mxu1 %vm1052_vm14, %v1497_v54 }
 0x30d   :  { %v1224_v55 = vld [vmem:[%s2847_s8 + $0x18] sm:$0xff] }
 0x30e   :  { %2039 = vmatprep.mubr.msk.f32.mxu0 %vm419_vm4, %v1224_v55 }
 0x30f   :  { %v2139_v56 = vpop.eup %2138 }
 0x310   :  { %v1028_v17 = vmul.f32 %v2139_v56, %v2538_v16 }
 0x311   :  { %v1315_v57 = vld [vmem:[%s2847_s8 + $0x2c] sm:$0xf] }
 0x312   :  { %1039 = vst.msk [vmem:[%s2847_s8 + $0x30] sm:$0xff] %vm419_vm4, %v1028_v17  ;;  %v1225_v58 = vld [vmem:[%s2847_s8 + $0x20] sm:$0xf]  ;;  %v1314_v59 = vld [vmem:[%s2847_s8 + $0x24] sm:$0xff] }
 0x313   :  { %v2141_v60 = vpop.eup %2140  ;;  %2040 = vmatmul.mubr.msk.f32.vlgmr.msra.gmra.mxu0 %vm419_vm4, %v1225_v58  ;;  %2046 = vmatprep.mubr.msk.f32.mxu1 %vm419_vm4, %v1314_v59 }
 0x314   :  { %v2143_v62 = vpop.eup %2142  ;;  %v1030_v63 = vmul.f32 %v2141_v60, %v2542_v19  ;;  %2047 = vmatmul.mubr.msk.f32.vlgmr.msra.gmra.mxu1 %vm419_vm4, %v1315_v57  ;;  %2050 = vmatpush3.msk.msra.mxu0 %vm1052_vm14, %v1407_v53 }
 0x315   :  { %v1032_v1 = vmul.f32 %v2143_v62, %v2544_v20  ;;  %2051 = vmatprep.subr.mxu0 %v2245_v11  ;;  %2057 = vmatpush3.msk.msra.mxu1 %vm1052_vm14, %v1497_v54 }
 0x316   :  { %1040 = vst.msk [vmem:[%s2847_s8 + $0x38] sm:$0xff] %vm419_vm4, %v1030_v63  ;;  %2052 = vmatpush3.msra.mxu0 %v2245_v11  ;;  %2058 = vmatprep.subr.mxu1 %v1496_v61 }
 0x317   :  { %1041 = vst.msk [vmem:[%s2847_s8 + $0x40] sm:$0xff] %vm419_vm4, %v1032_v1  ;;  %2059 = vmatpush3.msra.mxu1 %v1496_v61  ;;  %2063 = vmatprep.subr.mxu0 %v2144_v0 }
 0x319   :  { %v1404_v2 = vld [vmem:[%s2847_s8 + $0x30] sm:$0xff] }
 0x31a   :  { %2053 = vmatprep.mubr.msk.f32.mxu0 %vm419_vm4, %v1404_v2 }
 0x31d   :  { %v1405_v3 = vld [vmem:[%s2847_s8 + $0x38] sm:$0xf] }
 0x31e   :  { %2054 = vmatmul.mubr.msk.f32.vlgmr.msra.gmra.mxu0 %vm419_vm4, %v1405_v3  ;;  %v1494_v11 = vld [vmem:[%s2847_s8 + $0x3c] sm:$0xff]  ;;  %v1495_v4 = vld [vmem:[%s2847_s8 + $0x44] sm:$0xf] }
 0x31f   :  { %2060 = vmatprep.mubr.msk.f32.mxu1 %vm419_vm4, %v1494_v11  ;;  %2071 = vmatprep.mubr.msk.f32.mxu0 %vm2145_vm0, %v2144_v0 }
 0x320   :  { %2061 = vmatmul.mubr.msk.f32.vlgmr.msra.gmra.mxu1 %vm419_vm4, %v1495_v4  ;;  %2064 = vmatpush3.msra.mxu0 %v1596_v5 }
 0x321   :  { %2065 = vmatprep.subr.mxu0 %v2144_v0 }
 0x322   :  { %2066 = vmatpush3.msra.mxu0 %v1595_v6 }
 0x323   :  { %2067 = vmatprep.subr.mxu0 %v2144_v0 }
 0x324   :  { %2068 = vmatpush3.msra.mxu0 %v1594_v7 }
 0x325   :  { %2069 = vmatprep.subr.mxu0 %v2144_v0 }
 0x326   :  { %2070 = vmatpush3.msra.mxu0 %v1593_v8 }
 0x3c7   :  { %v2027_v9 = vpop.f32.mrf.mxu0 }
 0x3c8   :  { %1133 = vst.msk [vmem:[%s2850_s7 + $0x8] sm:$0xf] %vm1132_vm15, %v2027_v9  ;;  %v2034_v10 = vpop.f32.mrf.mxu1 }
 0x3c9   :  { %1223 = vst.msk [vmem:[%s2850_s7 + $0x14] sm:$0xf] %vm1132_vm15, %v2034_v10  ;;  %v1122_v13 = vpop.f32.mrf.mxu0 }
 0x3ca   :  { %1131 = vst.msk [vmem:[%s2850_s7] sm:$0xff] %vm48_vm1, %v1122_v13  ;;  %v1213_v14 = vpop.f32.mrf.mxu1 }
 0x3cb   :  { %1222 = vst.msk [vmem:[%s2850_s7 + $0xc] sm:$0xff] %vm48_vm1, %v1213_v14 }
 0x3d1   :  { %v1584_v15 = vld [vmem:[%s2850_s7] sm:$0xff] }
 0x3d2   :  { %2072 = vmatmul.mubr.msk.f32.vlgmr.msra.gmra.mxu0 %vm48_vm1, %v1584_v15  ;;  %v1585_v20 = vld [vmem:[%s2850_s7 + $0x8] sm:$0xff]  ;;  %v1586_v22 = vld [vmem:[%s2850_s7 + $0x10] sm:$0xff] }
 0x3d3   :  { %v2041_v16 = vpop.f32.mrf.mxu0  ;;  %2074 = vmatprep.mubr.msk.f32.mxu0 %vm2145_vm0, %v2144_v0 }
 0x3d4   :  { %1313 = vst.msk [vmem:[%s2850_s7 + $0x20] sm:$0xf] %vm1132_vm15, %v2041_v16  ;;  %v2048_v18 = vpop.f32.mrf.mxu1 }
 0x3d5   :  { %1403 = vst.msk [vmem:[%s2850_s7 + $0x2c] sm:$0xf] %vm1132_vm15, %v2048_v18  ;;  %v1303_v19 = vpop.f32.mrf.mxu0 }
 0x3d6   :  { %1312 = vst.msk [vmem:[%s2850_s7 + $0x18] sm:$0xff] %vm48_vm1, %v1303_v19  ;;  %v1393_v21 = vpop.f32.mrf.mxu1  ;;  %2075 = vmatmul.mubr.msk.f32.gmra.mxu0 %vm48_vm1, %v1585_v20 }
 0x3d7   :  { %1402 = vst.msk [vmem:[%s2850_s7 + $0x24] sm:$0xff] %vm48_vm1, %v1393_v21  ;;  %2077 = vmatprep.mubr.msk.f32.mxu0 %vm2145_vm0, %v2144_v0 }
 0x3da   :  { %2078 = vmatmul.mubr.msk.f32.gmra.mxu0 %vm48_vm1, %v1586_v22 }
 0x3db   :  { %2080 = vmatprep.mubr.msk.f32.mxu0 %vm2145_vm0, %v2144_v0 }
 0x3dd   :  { %v1587_v23 = vld [vmem:[%s2850_s7 + $0x18] sm:$0xff] }
 0x3de   :  { %2081 = vmatmul.mubr.msk.f32.gmra.mxu0 %vm48_vm1, %v1587_v23  ;;  %v2055_v24 = vpop.f32.mrf.mxu0  ;;  %v1588_v27 = vld [vmem:[%s2850_s7 + $0x20] sm:$0xff]  ;;  %v1589_v29 = vld [vmem:[%s2850_s7 + $0x28] sm:$0xff] }
 0x3df   :  { %1493 = vst.msk [vmem:[%s2850_s7 + $0x38] sm:$0xf] %vm1132_vm15, %v2055_v24  ;;  %2083 = vmatprep.mubr.msk.f32.mxu0 %vm2145_vm0, %v2144_v0 }
 0x3e0   :  { %v2062_v25 = vpop.f32.mrf.mxu1  ;;  %v1483_v26 = vpop.f32.mrf.mxu0 }
 0x3e1   :  { %1583 = vst.msk [vmem:[%s2850_s7 + $0x44] sm:$0xf] %vm1132_vm15, %v2062_v25 }
 0x3e2   :  { %1492 = vst.msk [vmem:[%s2850_s7 + $0x30] sm:$0xff] %vm48_vm1, %v1483_v26  ;;  %v1573_v28 = vpop.f32.mrf.mxu1  ;;  %2084 = vmatmul.mubr.msk.f32.gmra.mxu0 %vm48_vm1, %v1588_v27 }
 0x3e3   :  { %1582 = vst.msk [vmem:[%s2850_s7 + $0x3c] sm:$0xff] %vm48_vm1, %v1573_v28  ;;  %2086 = vmatprep.mubr.msk.f32.mxu0 %vm2145_vm0, %v2144_v0 }
 0x3e6   :  { %2087 = vmatmul.mubr.msk.f32.gmra.mxu0 %vm48_vm1, %v1589_v29 }
 0x3e7   :  { %2089 = vmatprep.mubr.msk.f32.mxu0 %vm2145_vm0, %v2144_v0 }
 0x3e9   :  { %v1590_v30 = vld [vmem:[%s2850_s7 + $0x30] sm:$0xff] }
 0x3ea   :  { %2090 = vmatmul.mubr.msk.f32.gmra.mxu0 %vm48_vm1, %v1590_v30  ;;  %v1591_v12 = vld [vmem:[%s2850_s7 + $0x38] sm:$0xff]  ;;  %v1592_v31 = vld [vmem:[%s2850_s7 + $0x40] sm:$0xff] }
 0x3eb   :  { %2092 = vmatprep.mubr.msk.f32.mxu0 %vm2145_vm0, %v2144_v0 }
 0x3ee   :  { %2093 = vmatmul.mubr.msk.f32.gmra.mxu0 %vm48_vm1, %v1591_v12 }
 0x3ef   :  { %2095 = vmatprep.mubr.msk.f32.mxu0 %vm2145_vm0, %v2144_v0 }
 0x3f2   :  { %2096 = vmatmul.mubr.msk.f32.gmra.mxu0 %vm48_vm1, %v1592_v31 }
 0x492   :  { %v1690_v32 = vpop.f32.mrf.mxu0 }
 0x493   :  { %1734 = vst.msk [vmem:[%s2850_s7] sm:$0xff] %vm48_vm1, %v1690_v32 }
 0x494   :  { %v2073_v33 = vpop.f32.mrf.mxu0 }
 0x496   :  { %v1695_v34 = vpop.f32.mrf.mxu0 }
 0x497   :  { %1735 = vst.msk [vmem:[%s2850_s7 + $0x8] sm:$0xff] %vm48_vm1, %v1695_v34 }
 0x498   :  { %v2076_v0 = vpop.f32.mrf.mxu0 }
 0x49a   :  { %v1700_v35 = vpop.f32.mrf.mxu0 }
 0x49b   :  { %1736 = vst.msk [vmem:[%s2850_s7 + $0x10] sm:$0xff] %vm48_vm1, %v1700_v35 }
 0x49c   :  { %v2079_v36 = vpop.f32.mrf.mxu0 }
 0x49e   :  { %v1705_v37 = vpop.f32.mrf.mxu0 }
 0x49f   :  { %1737 = vst.msk [vmem:[%s2850_s7 + $0x18] sm:$0xff] %vm48_vm1, %v1705_v37 }
 0x4a0   :  { %v2082_v38 = vpop.f32.mrf.mxu0 }
 0x4a2   :  { %v1710_v39 = vpop.f32.mrf.mxu0 }
 0x4a3   :  { %1738 = vst.msk [vmem:[%s2850_s7 + $0x20] sm:$0xff] %vm48_vm1, %v1710_v39 }
 0x4a4   :  { %v2085_v40 = vpop.f32.mrf.mxu0 }
 0x4a6   :  { %v1715_v41 = vpop.f32.mrf.mxu0 }
 0x4a7   :  { %1739 = vst.msk [vmem:[%s2850_s7 + $0x28] sm:$0xff] %vm48_vm1, %v1715_v41 }
 0x4a8   :  { %v2088_v42 = vpop.f32.mrf.mxu0 }
 0x4aa   :  { %v1720_v43 = vpop.f32.mrf.mxu0 }
 0x4ab   :  { %1740 = vst.msk [vmem:[%s2850_s7 + $0x30] sm:$0xff] %vm48_vm1, %v1720_v43 }
 0x4ac   :  { %v2091_v44 = vpop.f32.mrf.mxu0 }
 0x4ae   :  { %v1725_v45 = vpop.f32.mrf.mxu0 }
 0x4af   :  { %1741 = vst.msk [vmem:[%s2850_s7 + $0x38] sm:$0xff] %vm48_vm1, %v1725_v45 }
 0x4b0   :  { %v2094_v46 = vpop.f32.mrf.mxu0 }
 0x4b2   :  { %v1730_v47 = vpop.f32.mrf.mxu0 }
 0x4b3   :  { %1742 = vst.msk [vmem:[%s2850_s7 + $0x40] sm:$0xff] %vm48_vm1, %v1730_v47 }
 0x4b4   :  { %v2097_v48 = vpop.f32.mrf.mxu0 }

</bundles_post_ra>
